<compile_context>
chip_gen: v7x
topology: tpu7x:2x2x1
jax: 0.10.0
libtpu: 0.0.40
codegen_flags: <defaults>
</compile_context>

<pallas_src>
import functools

import jax
import jax.numpy as jnp
from jax import lax
from jax.experimental import pallas as pl
from jax.experimental.pallas import tpu as pltpu

LN_EPS = 1e-5
_INV_SQRT2 = 0.7071067811865476


def _gelu_exact(x):
    # Matches torch.nn.functional.gelu default (erf formulation).
    return 0.5 * x * (1.0 + lax.erf(x * _INV_SQRT2))


def _round_up(x, m):
    return ((x + m - 1) // m) * m


def _vmem_budget_bytes():
    """Usable scoped-VMEM budget, leaving headroom for compiler scratch."""
    try:
        cap = int(pltpu.get_tpu_info().vmem_capacity_bytes)
    except Exception:
        cap = 64 * 1024 * 1024          # conservative: v7x per-TC VMEM
    # Leave ~1/8th (min 8 MiB) for compiler-internal scratch / DMA descriptors.
    return max(cap - max(cap // 8, 8 * 1024 * 1024), 16 * 1024 * 1024)


def _tiles_vmem_bytes(tm, tn, e, out_itemsize):
    """Estimated VMEM working set for the chosen tiles (double-buffered I/O)."""
    return (2 * tm * e * 2              # features tile (bf16), double-buffered
            + 2 * e * e * 2             # dense weight (bf16), grid-invariant
            + 2 * 3 * e * 4             # dense bias + LN gamma/beta (f32)
            + 2 * e * tn * 2            # output-weight tile (bf16)
            + 2 * tn * 4                # output-bias tile (f32)
            + 2 * tm * tn * out_itemsize  # logits tile
            + tm * e * 2)               # persistent post-LN scratch (bf16)


def _lm_head_kernel(feat_ref, wd_ref, bd_ref, g_ref, b_ref, wo_ref, bo_ref,
                    out_ref, hn_ref):
    """Grid = (token_tiles, vocab_tiles); vocab axis is innermost/sequential."""
    j = pl.program_id(1)

    # ---- prologue: dense -> gelu -> LayerNorm, once per token tile ----------
    @pl.when(j == 0)
    def _prologue():
        # dense: (tm, E) @ (E, E) on the MXU, f32 accumulate.
        h = jnp.dot(feat_ref[...], wd_ref[...],
                    preferred_element_type=jnp.float32)
        h = h + bd_ref[...].astype(jnp.float32)
        h = _gelu_exact(h)

        # LayerNorm over last dim (biased variance, eps=1e-5), f32 math.
        mean = jnp.mean(h, axis=-1, keepdims=True)
        centered = h - mean
        var = jnp.mean(centered * centered, axis=-1, keepdims=True)
        hn = centered * lax.rsqrt(var + LN_EPS)
        hn = hn * g_ref[...].astype(jnp.float32) + b_ref[...].astype(jnp.float32)

        # Cache for all vocab tiles of this token tile (bf16: MXU-ready).
        hn_ref[...] = hn.astype(hn_ref.dtype)

    # ---- output projection for this vocab tile ------------------------------
    # hn (tm, E) @ wo_t tile (E, tn) -> (tm, tn), plain (m,k)x(k,n) matmul.
    logits = jnp.dot(hn_ref[...], wo_ref[...],
                     preferred_element_type=jnp.float32)
    logits = logits + bo_ref[...].astype(jnp.float32)
    out_ref[...] = logits.astype(out_ref.dtype)


@functools.partial(jax.jit,
                   static_argnames=("tm", "tn", "out_dtype", "min_token_tiles"))
def roberta_lm_head(features, wd, bd, gamma, beta, wo, bo, *,
                    tm=1024, tn=1024, out_dtype=jnp.bfloat16,
                    min_token_tiles=1):
    """features: (N, E) -> logits: (N, V), default bf16.

    wd: (E, E)   dense weight (PyTorch layout: out, in)
    bd: (1, E)   dense bias
    gamma/beta: (1, E) LayerNorm affine
    wo: (V, E)   output projection weight (PyTorch layout: out, in)
    bo: (1, V)   output projection bias

    Note: for repeated calls with fixed weights, cache the transposed bf16
    weights outside this call to avoid re-transposing wo every invocation.
    """
    n, e = features.shape
    v = wo.shape[0]
    out_dtype = jnp.dtype(out_dtype)

    # --- tile selection (hardware-legal, shape-aware, VMEM-aware) -------------
    tm = max(_round_up(int(tm), 8), 8)
    tn = max(_round_up(int(tn), 128), 128)
    tm = min(tm, _round_up(n, 8))
    tn = min(tn, _round_up(v, 128))
    if min_token_tiles > 1:
        # Keep >= min_token_tiles token tiles (use 2 on v7x so the "parallel"
        # token axis feeds both TensorCores).
        tm = min(tm, max(_round_up(-(-n // min_token_tiles), 8), 8))

    budget = _vmem_budget_bytes()
    while _tiles_vmem_bytes(tm, tn, e, out_dtype.itemsize) > budget and tm > 256:
        tm //= 2
    while _tiles_vmem_bytes(tm, tn, e, out_dtype.itemsize) > budget and tn > 128:
        tn //= 2
    est = _tiles_vmem_bytes(tm, tn, e, out_dtype.itemsize)
    vmem_limit = int(min(budget, max(2 * est, 32 * 1024 * 1024)))

    # --- host-side layout / dtype prep ----------------------------------------
    feat_b = features.astype(jnp.bfloat16)       # halves feature-tile DMA
    wd_t = wd.T.astype(jnp.bfloat16)             # (E_in, E_out): (k, n) layout
    wo_t = wo.T.astype(jnp.bfloat16)             # (E, V):        (k, n) layout
    bd_f32 = bd.astype(jnp.float32)
    g_f32 = gamma.astype(jnp.float32)
    b_f32 = beta.astype(jnp.float32)
    bo_f32 = bo.astype(jnp.float32)

    # --- zero-pad N and V to tile multiples (vocab 50265 etc. now legal) ------
    n_pad = _round_up(n, tm)
    v_pad = _round_up(v, tn)
    if n_pad != n:
        feat_b = jnp.pad(feat_b, ((0, n_pad - n), (0, 0)))
    if v_pad != v:
        wo_t = jnp.pad(wo_t, ((0, 0), (0, v_pad - v)))
        bo_f32 = jnp.pad(bo_f32, ((0, 0), (0, v_pad - v)))

    grid = (n_pad // tm, v_pad // tn)
    out = pl.pallas_call(
        _lm_head_kernel,
        out_shape=jax.ShapeDtypeStruct((n_pad, v_pad), out_dtype),
        grid_spec=pltpu.PrefetchScalarGridSpec(
            num_scalar_prefetch=0,
            grid=grid,
            in_specs=[
                pl.BlockSpec((tm, e), lambda i, j: (i, 0)),    # features tile
                pl.BlockSpec((e, e), lambda i, j: (0, 0)),     # dense weight^T
                pl.BlockSpec((1, e), lambda i, j: (0, 0)),     # dense bias
                pl.BlockSpec((1, e), lambda i, j: (0, 0)),     # LN gamma
                pl.BlockSpec((1, e), lambda i, j: (0, 0)),     # LN beta
                pl.BlockSpec((e, tn), lambda i, j: (0, j)),    # out weight^T tile
                pl.BlockSpec((1, tn), lambda i, j: (0, j)),    # out bias tile
            ],
            out_specs=pl.BlockSpec((tm, tn), lambda i, j: (i, j)),
            scratch_shapes=[pltpu.VMEM((tm, e), jnp.bfloat16)],  # cached post-LN
        ),
        compiler_params=pltpu.CompilerParams(
            dimension_semantics=("parallel", "arbitrary"),
            vmem_limit_bytes=vmem_limit),
    )(feat_b, wd_t, bd_f32, g_f32, b_f32, wo_t, bo_f32)

    return out[:n, :v]


def roberta_lm_head_apply(features, params, masked_tokens=None, **kw):
    # TODO(synk): masked_tokens boolean gather has a dynamic output shape; it
    # is applied in plain JAX here — callers should bucket/pad the masked-token
    # count to a fixed size to avoid per-shape recompiles.
    if masked_tokens is not None:
        features = features[masked_tokens, :]
    return roberta_lm_head(features, params["wd"], params["bd"],
                           params["gamma"], params["beta"],
                           params["wo"], params["bo"], **kw)


def _reference_bf16_weights(features, p):
    """Mirrors the kernel's numerics (bf16 MXU feeds, f32 accumulate/LN)."""
    bf = jnp.bfloat16
    x = features.astype(bf)
    wd_t = p["wd"].T.astype(bf)
    wo_t = p["wo"].T.astype(bf)
    h = jnp.dot(x, wd_t, preferred_element_type=jnp.float32)
    h = h + p["bd"][0]
    h = _gelu_exact(h)
    mean = h.mean(-1, keepdims=True)
    var = ((h - mean) ** 2).mean(-1, keepdims=True)
    hn = (h - mean) * lax.rsqrt(var + LN_EPS)
    hn = hn * p["gamma"][0] + p["beta"][0]
    hn = hn.astype(bf)
    logits = jnp.dot(hn, wo_t, preferred_element_type=jnp.float32)
    return logits + p["bo"][0]


def _reference_f32(features, p):
    """Pure-f32 module semantics (loose sanity check)."""
    x = features @ p["wd"].T + p["bd"][0]
    x = _gelu_exact(x)
    mean = x.mean(-1, keepdims=True)
    var = ((x - mean) ** 2).mean(-1, keepdims=True)
    x = (x - mean) / jnp.sqrt(var + LN_EPS)
    x = x * p["gamma"][0] + p["beta"][0]
    return x @ p["wo"].T + p["bo"][0]


if __name__ == "__main__":
    # Small but structure-exercising shapes: 200 tokens (pads to 256),
    # embed_dim=128, output_dim=300 (pads to 384); tm=128, tn=128 -> 2x3 grid,
    # exercising hn-caching, vocab streaming, and N/V padding paths.
    num_tokens, embed_dim, output_dim = 200, 128, 300
    tm, tn = 128, 128

    key = jax.random.PRNGKey(0)
    k_feat, k_wd, k_bd, k_g, k_b, k_wo, k_bo = jax.random.split(key, 7)

    features = jax.random.normal(k_feat, (num_tokens, embed_dim),
                                 dtype=jnp.float32)
    params = {
        "wd": jax.random.normal(k_wd, (embed_dim, embed_dim),
                                dtype=jnp.float32) * 0.05,
        "bd": jax.random.normal(k_bd, (1, embed_dim), dtype=jnp.float32) * 0.01,
        "gamma": 1.0 + 0.1 * jax.random.normal(k_g, (1, embed_dim),
                                               dtype=jnp.float32),
        "beta": 0.05 * jax.random.normal(k_b, (1, embed_dim),
                                         dtype=jnp.float32),
        "wo": jax.random.normal(k_wo, (output_dim, embed_dim),
                                dtype=jnp.float32) * 0.05,
        "bo": 0.01 * jax.random.normal(k_bo, (1, output_dim),
                                       dtype=jnp.float32),
    }

    out = roberta_lm_head_apply(features, params, tm=tm, tn=tn)
    out = jax.block_until_ready(out)
    assert out.shape == (num_tokens, output_dim)
    out_f32 = out.astype(jnp.float32)

    # Check vs a reference that mirrors the kernel's bf16-weight numerics
    # (output is stored as bf16, so tolerance covers one bf16 rounding).
    ref_bf = _reference_bf16_weights(features, params)
    err_bf = jnp.abs(out_f32 - ref_bf).max()
    assert jnp.allclose(out_f32, ref_bf, atol=2e-2, rtol=2e-2), \
        f"max err vs bf16-weight reference: {err_bf}"

    # Loose sanity check vs pure-f32 module semantics.
    ref_f32 = _reference_f32(features, params)
    err_f32 = jnp.abs(out_f32 - ref_f32).max()
    assert jnp.allclose(out_f32, ref_f32, atol=7e-2, rtol=5e-2), \
        f"max err vs f32 reference: {err_f32}"

    print("KERNEL_OK")
</pallas_src>

<mosaic_0001>
module attributes {stable_mosaic.version = 11 : i64} {
  func.func @_lm_head_kernel(%arg0: i32, %arg1: i32, %arg2: memref<128x128xbf16, #tpu.memory_space<vmem>>, %arg3: memref<128x128xbf16, #tpu.memory_space<vmem>>, %arg4: memref<1x128xf32, #tpu.memory_space<vmem>>, %arg5: memref<1x128xf32, #tpu.memory_space<vmem>>, %arg6: memref<1x128xf32, #tpu.memory_space<vmem>>, %arg7: memref<128x128xbf16, #tpu.memory_space<vmem>>, %arg8: memref<1x128xf32, #tpu.memory_space<vmem>>, %arg9: memref<128x128xbf16, #tpu.memory_space<vmem>>, %arg10: memref<128x128xbf16, #tpu.memory_space<vmem>>) attributes {dimension_semantics = [#tpu.dimension_semantics<parallel>, #tpu.dimension_semantics<arbitrary>], iteration_bounds = array<i64: 2, 3>, scalar_prefetch = 0 : i64, scratch_operands = 1 : i64, tpu.core_type = #tpu.core_type<tc>, window_params = [{transform_indices = @transform_0, window_bounds = array<i64: 128, 128>}, {pipeline_mode = #tpu.pipeline_mode<synchronous>, transform_indices = @transform_1, window_bounds = array<i64: 128, 128>}, {pipeline_mode = #tpu.pipeline_mode<synchronous>, transform_indices = @transform_2, window_bounds = array<i64: 1, 128>}, {pipeline_mode = #tpu.pipeline_mode<synchronous>, transform_indices = @transform_3, window_bounds = array<i64: 1, 128>}, {pipeline_mode = #tpu.pipeline_mode<synchronous>, transform_indices = @transform_4, window_bounds = array<i64: 1, 128>}, {transform_indices = @transform_5, window_bounds = array<i64: 128, 128>}, {transform_indices = @transform_6, window_bounds = array<i64: 1, 128>}, {transform_indices = @transform_7, window_bounds = array<i64: 128, 128>}]} {
    %c0_i32 = arith.constant 0 : i32
    %0 = arith.cmpi eq, %arg1, %c0_i32 : i32
    %1 = arith.extui %0 : i1 to i32
    %c0_i32_0 = arith.constant 0 : i32
    %2 = arith.cmpi ne, %1, %c0_i32_0 : i32
    scf.if %2 {
      %c0_8 = arith.constant 0 : index
      %c0_9 = arith.constant 0 : index
      %11 = vector.load %arg2[%c0_8, %c0_9] : memref<128x128xbf16, #tpu.memory_space<vmem>>, vector<128x128xbf16>
      %c0_10 = arith.constant 0 : index
      %c0_11 = arith.constant 0 : index
      %12 = vector.load %arg3[%c0_10, %c0_11] : memref<128x128xbf16, #tpu.memory_space<vmem>>, vector<128x128xbf16>
      %cst_12 = arith.constant dense<0.000000e+00> : vector<128x128xf32>
      %13 = tpu.matmul %11, %12, %cst_12 {dimension_numbers = #tpu.dot_dimension_numbers<[1], [0], [0], [1], [0, 0, 1, 1], [], []>} : vector<128x128xbf16>, vector<128x128xbf16>, vector<128x128xf32> -> vector<128x128xf32>
      %c0_13 = arith.constant 0 : index
      %c0_14 = arith.constant 0 : index
      %14 = vector.load %arg4[%c0_13, %c0_14] : memref<1x128xf32, #tpu.memory_space<vmem>>, vector<1x128xf32>
      %15 = vector.broadcast %14 : vector<1x128xf32> to vector<128x128xf32>
      %16 = arith.addf %13, %15 : vector<128x128xf32>
      %cst_15 = arith.constant 5.000000e-01 : f32
      %17 = vector.broadcast %cst_15 : f32 to vector<128x128xf32>
      %18 = arith.mulf %17, %16 : vector<128x128xf32>
      %cst_16 = arith.constant 0.707106769 : f32
      %19 = vector.broadcast %cst_16 : f32 to vector<128x128xf32>
      %20 = arith.mulf %16, %19 : vector<128x128xf32>
      %21 = math.erf %20 : vector<128x128xf32>
      %cst_17 = arith.constant 1.000000e+00 : f32
      %22 = vector.broadcast %cst_17 : f32 to vector<128x128xf32>
      %23 = arith.addf %22, %21 : vector<128x128xf32>
      %24 = arith.mulf %18, %23 : vector<128x128xf32>
      %cst_18 = arith.constant dense<0.000000e+00> : vector<128xf32>
      %25 = vector.multi_reduction <add>, %24, %cst_18 [1] : vector<128x128xf32> to vector<128xf32>
      %26 = vector.shape_cast %25 : vector<128xf32> to vector<128x1xf32>
      %cst_19 = arith.constant 1.280000e+02 : f32
      %27 = vector.broadcast %cst_19 : f32 to vector<128x1xf32>
      %28 = arith.divf %26, %27 : vector<128x1xf32>
      %29 = vector.broadcast %28 : vector<128x1xf32> to vector<128x128xf32>
      %30 = arith.subf %24, %29 : vector<128x128xf32>
      %31 = arith.mulf %30, %30 : vector<128x128xf32>
      %cst_20 = arith.constant dense<0.000000e+00> : vector<128xf32>
      %32 = vector.multi_reduction <add>, %31, %cst_20 [1] : vector<128x128xf32> to vector<128xf32>
      %33 = vector.shape_cast %32 : vector<128xf32> to vector<128x1xf32>
      %cst_21 = arith.constant 1.280000e+02 : f32
      %34 = vector.broadcast %cst_21 : f32 to vector<128x1xf32>
      %35 = arith.divf %33, %34 : vector<128x1xf32>
      %cst_22 = arith.constant 9.99999974E-6 : f32
      %36 = vector.broadcast %cst_22 : f32 to vector<128x1xf32>
      %37 = arith.addf %35, %36 : vector<128x1xf32>
      %38 = math.rsqrt %37 : vector<128x1xf32>
      %39 = vector.broadcast %38 : vector<128x1xf32> to vector<128x128xf32>
      %40 = arith.mulf %30, %39 : vector<128x128xf32>
      %c0_23 = arith.constant 0 : index
      %c0_24 = arith.constant 0 : index
      %41 = vector.load %arg5[%c0_23, %c0_24] : memref<1x128xf32, #tpu.memory_space<vmem>>, vector<1x128xf32>
      %42 = vector.broadcast %41 : vector<1x128xf32> to vector<128x128xf32>
      %43 = arith.mulf %40, %42 : vector<128x128xf32>
      %c0_25 = arith.constant 0 : index
      %c0_26 = arith.constant 0 : index
      %44 = vector.load %arg6[%c0_25, %c0_26] : memref<1x128xf32, #tpu.memory_space<vmem>>, vector<1x128xf32>
      %45 = vector.broadcast %44 : vector<1x128xf32> to vector<128x128xf32>
      %46 = arith.addf %43, %45 : vector<128x128xf32>
      %47 = arith.truncf %46 : vector<128x128xf32> to vector<128x128xbf16>
      %c0_27 = arith.constant 0 : index
      %c0_28 = arith.constant 0 : index
      %48 = vector.load %arg10[%c0_27, %c0_28] : memref<128x128xbf16, #tpu.memory_space<vmem>>, vector<128x128xbf16>
      tpu.vector_store %arg10[%c0_27, %c0_28], %47 {strides = array<i32>} : memref<128x128xbf16, #tpu.memory_space<vmem>>, vector<128x128xbf16>,
    } else {
    }
    %c0 = arith.constant 0 : index
    %c0_1 = arith.constant 0 : index
    %3 = vector.load %arg10[%c0, %c0_1] : memref<128x128xbf16, #tpu.memory_space<vmem>>, vector<128x128xbf16>
    %c0_2 = arith.constant 0 : index
    %c0_3 = arith.constant 0 : index
    %4 = vector.load %arg7[%c0_2, %c0_3] : memref<128x128xbf16, #tpu.memory_space<vmem>>, vector<128x128xbf16>
    %cst = arith.constant dense<0.000000e+00> : vector<128x128xf32>
    %5 = tpu.matmul %3, %4, %cst {dimension_numbers = #tpu.dot_dimension_numbers<[1], [0], [0], [1], [0, 0, 1, 1], [], []>} : vector<128x128xbf16>, vector<128x128xbf16>, vector<128x128xf32> -> vector<128x128xf32>
    %c0_4 = arith.constant 0 : index
    %c0_5 = arith.constant 0 : index
    %6 = vector.load %arg8[%c0_4, %c0_5] : memref<1x128xf32, #tpu.memory_space<vmem>>, vector<1x128xf32>
    %7 = vector.broadcast %6 : vector<1x128xf32> to vector<128x128xf32>
    %8 = arith.addf %5, %7 : vector<128x128xf32>
    %9 = arith.truncf %8 : vector<128x128xf32> to vector<128x128xbf16>
    %c0_6 = arith.constant 0 : index
    %c0_7 = arith.constant 0 : index
    %10 = vector.load %arg9[%c0_6, %c0_7] : memref<128x128xbf16, #tpu.memory_space<vmem>>, vector<128x128xbf16>
    tpu.vector_store %arg9[%c0_6, %c0_7], %9 {strides = array<i32>} : memref<128x128xbf16, #tpu.memory_space<vmem>>, vector<128x128xbf16>,
    return
  }
  func.func @transform_0(%arg0: i32, %arg1: i32) -> (i32, i32) {
    %c0_i32 = arith.constant 0 : i32
    %c0_i32_0 = arith.constant 0 : i32
    return %arg0, %c0_i32 : i32, i32
  }
  func.func @transform_1(%arg0: i32, %arg1: i32) -> (i32, i32) {
    %c0_i32 = arith.constant 0 : i32
    %c0_i32_0 = arith.constant 0 : i32
    %c0_i32_1 = arith.constant 0 : i32
    return %c0_i32, %c0_i32_0 : i32, i32
  }
  func.func @transform_2(%arg0: i32, %arg1: i32) -> (i32, i32) {
    %c0_i32 = arith.constant 0 : i32
    %c0_i32_0 = arith.constant 0 : i32
    %c0_i32_1 = arith.constant 0 : i32
    return %c0_i32, %c0_i32_0 : i32, i32
  }
  func.func @transform_3(%arg0: i32, %arg1: i32) -> (i32, i32) {
    %c0_i32 = arith.constant 0 : i32
    %c0_i32_0 = arith.constant 0 : i32
    %c0_i32_1 = arith.constant 0 : i32
    return %c0_i32, %c0_i32_0 : i32, i32
  }
  func.func @transform_4(%arg0: i32, %arg1: i32) -> (i32, i32) {
    %c0_i32 = arith.constant 0 : i32
    %c0_i32_0 = arith.constant 0 : i32
    %c0_i32_1 = arith.constant 0 : i32
    return %c0_i32, %c0_i32_0 : i32, i32
  }
  func.func @transform_5(%arg0: i32, %arg1: i32) -> (i32, i32) {
    %c0_i32 = arith.constant 0 : i32
    %c0_i32_0 = arith.constant 0 : i32
    return %c0_i32, %arg1 : i32, i32
  }
  func.func @transform_6(%arg0: i32, %arg1: i32) -> (i32, i32) {
    %c0_i32 = arith.constant 0 : i32
    %c0_i32_0 = arith.constant 0 : i32
    return %c0_i32, %arg1 : i32, i32
  }
  func.func @transform_7(%arg0: i32, %arg1: i32) -> (i32, i32) {
    %c0_i32 = arith.constant 0 : i32
    return %arg0, %arg1 : i32, i32
  }
}

</mosaic_0001>

<bundles_post_ra>
// kernel: roberta_lm_head.1
= control target key start
LH: loop header
LB: loop body
LE: loop exit
PB: predicated region body
PF: predicated region fallthrough
CT: control target
= control target key end

     0   :  { %s2436_s0 = inlined_call_operand.vmem [shape: bf16[256,128], index: 0, kind: input, shape index: {}]   ;;  %s2437_s1 = inlined_call_operand.vmem [shape: bf16[128,128], index: 1, kind: input, shape index: {}]   ;;  %s2438_s2 = inlined_call_operand.vmem [shape: f32[1,128], index: 2, kind: input, shape index: {}]   ;;  %s2439_s3 = inlined_call_operand.vmem [shape: f32[1,128], index: 3, kind: input, shape index: {}]   ;;  %s2440_s4 = inlined_call_operand.vmem [shape: f32[1,128], index: 4, kind: input, shape index: {}]   ;;  %s2441_s5 = inlined_call_operand.vmem [shape: bf16[128,384], index: 5, kind: input, shape index: {}]   ;;  %s2442_s6 = inlined_call_operand.vmem [shape: f32[1,384], index: 6, kind: input, shape index: {}]   ;;  %s2443_s7 = inlined_call_operand.vmem [shape: bf16[256,384], index: 7, kind: output, shape index: {}]  }
   0x1   :  { %2447 = sst [smem:[#allocation8_spill]] %s2441_s5 }
   0x2   :  { %s1965_s24 = smov 0   ;;  %s1967_s25 = smov 0  }
   0x3   :  { %s1969_s26 = smov 0   ;;  %s1971_s27 = smov 0  }
   0x4   :  { %s1973_s28 = smov 0   ;;  %s1975_s29 = smov 0  }
   0x5   :  { %s1977_s30 = smov 0   ;;  %s1979_s8 = smov 0  }
   0x6   :  { %s1981_s9 = smov 0  }
   0x7 LB: > { %2448 = sst [smem:[#allocation5_spill]] %s1919_s8  ;;  %s1439_s10 = sadd.s32 4294967295, %s1923_s9   ;;  %s1923_s9 = sphi %s1981_s9, %s17_s9   ;;  %s1919_s8 = sphi %s1979_s8, %s2455_s8   ;;  %s1915_s30 = sphi %s1977_s30, %s2461_s30   ;;  %s1911_s29 = sphi %s1975_s29, %s2453_s29   ;;  %s1907_s28 = sphi %s1973_s28, %s2460_s28   ;;  %s1903_s27 = sphi %s1971_s27, %s2459_s27   ;;  %s1899_s26 = sphi %s1969_s26, %s2458_s26   ;;  %s1895_s25 = sphi %s1967_s25, %s2457_s25   ;;  %s1891_s24 = sphi %s1965_s24, %s2456_s24  }
   0x8   : > { %s26_s11 = sadd.s32 1, %s1915_s30  ;;  %s29_s12 = sadd.s32 1, %s1919_s8 }
   0x9   : > { %p27_p0 = scmp.ge.s32.totalorder %s26_s11, 3  ;;  %s146_s13 = sadd.s32 1, %s1903_s27 }
   0xa   : > { %p153_p1 = scmp.ne.s32.totalorder %s1903_s27, %s1899_s26  ;;  %p154_p2 = scmp.eq.s32.totalorder %s1923_s9, 0 }
   0xb   : > { %s2463_s11 = smov (%p27_p0, %s26_s11), 0  ;;  %s2465_s12 = smov (!%p27_p0, %s29_s12), %s1919_s8 }
   0xc   : > { %2449 = sst [smem:[#allocation6_spill]] %s2463_s11  ;;  %s143_s14 = ssub.s32 %s1915_s30, %s2463_s11 }
   0xd   : > { %p31_p3 = scmp.ge.s32.totalorder %s2465_s12, 2  ;;  %p144_p4 = scmp.eq.s32.totalorder %s143_s14, 0 }
   0xe   : > { %p155_p5 = por %p154_p2, %p153_p1  ;;  %s200_s15 = sadd.s32 1, %s1895_s25 }
   0xf   : > { %s2467_s12 = smov (%p31_p3, %s2465_s12), 0  ;;  %p210_p6 = scmp.ne.s32.totalorder %s1895_s25, %s1891_s24 }
  0x10   : > { %2450 = sst [smem:[#allocation7_spill]] %s2467_s12  ;;  %s195_s17 = ssub.s32 %s1919_s8, %s2467_s12 }
  0x11   : > { %s2026_s16 = scalar_select %p144_p4, %s1903_s27, %s146_s13  }
  0x12   : > { %s197_s18 = sor.u32 %s195_s17, %s143_s14  ;;  %p211_p7 = scmp.eq.s32.totalorder %s1439_s10, 5 }
  0x13   : > { %p198_p8 = scmp.eq.s32.totalorder %s197_s18, 0  ;;  %p1442_p10 = scmp.ge.s32.totalorder %s1923_s9, 6 }
  0x14   : > { %p2032_p9 = por %p211_p7, %p210_p6 }
  0x15   : > { %s2037_s20 = scalar_select %p198_p8, %s1895_s25, %s200_s15  }
  0x16   : > { %245 = sbr.rel (%p1442_p10) target bundleno = 49 (0x31), region = 32 }
  0x1d   : > { %257 = sbr.rel (!%p155_p5) target bundleno = 49 (0x31), region = 40  ;;  %s259_s21 = sand.u32 (%p155_p5), 1, %s1903_s27  }
  0x1e   : > { %s1444_s22 = sshll.u32 (%p155_p5), %s1915_s30, 2  ;;  %s1443_s23 = sshll.u32 (%p155_p5), %s259_s21, 6 }
  0x1f   : > { %s2452_s5 = sld [smem:[#allocation8_spill]] (%p155_p5)  ;;  %s261_s14 = scalar_lea.vmem (%p155_p5), [#allocation3], %s1443_s23 }
  0x25   : > { %s2045_s10 = scalar_lea.vmem %s2452_s5, %s1444_s22 }
  0x26   : > { %v279_v0 = vld [vmem:[%s2045_s10] sm:$0xf]  ;;  %v281_v1 = vld [vmem:[%s2045_s10 + $0xc] sm:$0xf]  ;;  %v283_v2 = vld [vmem:[%s2045_s10 + $0x18] sm:$0xf] }
  0x27   : > { %280 = vst [vmem:[%s261_s14] sm:$0xf] %v279_v0  ;;  %282 = vst [vmem:[%s261_s14 + $0x4] sm:$0xf] %v281_v1  ;;  %v285_v3 = vld [vmem:[%s2045_s10 + $0x24] sm:$0xf] }
  0x28   : > { %v287_v4 = vld [vmem:[%s2045_s10 + $0x30] sm:$0xf]  ;;  %284 = vst [vmem:[%s261_s14 + $0x8] sm:$0xf] %v283_v2  ;;  %286 = vst [vmem:[%s261_s14 + $0xc] sm:$0xf] %v285_v3 }
  0x29   : > { %288 = vst [vmem:[%s261_s14 + $0x10] sm:$0xf] %v287_v4  ;;  %v289_v5 = vld [vmem:[%s2045_s10 + $0x3c] sm:$0xf]  ;;  %v291_v6 = vld [vmem:[%s2045_s10 + $0x48] sm:$0xf] }
  0x2a   : > { %v293_v7 = vld [vmem:[%s2045_s10 + $0x54] sm:$0xf]  ;;  %290 = vst [vmem:[%s261_s14 + $0x14] sm:$0xf] %v289_v5  ;;  %292 = vst [vmem:[%s261_s14 + $0x18] sm:$0xf] %v291_v6 }
  0x2b   : > { %294 = vst [vmem:[%s261_s14 + $0x1c] sm:$0xf] %v293_v7  ;;  %v295_v8 = vld [vmem:[%s2045_s10 + $0x60] sm:$0xf]  ;;  %v297_v9 = vld [vmem:[%s2045_s10 + $0x6c] sm:$0xf] }
  0x2c   : > { %v299_v10 = vld [vmem:[%s2045_s10 + $0x78] sm:$0xf]  ;;  %296 = vst [vmem:[%s261_s14 + $0x20] sm:$0xf] %v295_v8  ;;  %298 = vst [vmem:[%s261_s14 + $0x24] sm:$0xf] %v297_v9 }
  0x2d   : > { %300 = vst [vmem:[%s261_s14 + $0x28] sm:$0xf] %v299_v10  ;;  %v301_v11 = vld [vmem:[%s2045_s10 + $0x84] sm:$0xf]  ;;  %v303_v12 = vld [vmem:[%s2045_s10 + $0x90] sm:$0xf] }
  0x2e   : > { %v305_v13 = vld [vmem:[%s2045_s10 + $0x9c] sm:$0xf]  ;;  %302 = vst [vmem:[%s261_s14 + $0x2c] sm:$0xf] %v301_v11  ;;  %304 = vst [vmem:[%s261_s14 + $0x30] sm:$0xf] %v303_v12 }
  0x2f   : > { %306 = vst [vmem:[%s261_s14 + $0x34] sm:$0xf] %v305_v13  ;;  %v307_v14 = vld [vmem:[%s2045_s10 + $0xa8] sm:$0xf]  ;;  %v309_v15 = vld [vmem:[%s2045_s10 + $0xb4] sm:$0xf] }
  0x30   : > { %308 = vst [vmem:[%s261_s14 + $0x38] sm:$0xf] %v307_v14  ;;  %310 = vst [vmem:[%s261_s14 + $0x3c] sm:$0xf] %v309_v15 }
  0x31 PF: > { %p1445_p11 = scmp.ge.s32.totalorder %s1923_s9, 1  ;;  %p370_p12 = scmp.lt.s32.totalorder %s1923_s9, 7 }
  0x33   : > { %p371_p13 = pnand %p1445_p11, %p370_p12 }
  0x34   : > { %s377_s12 = sand.u32 (!%p371_p13), 1, %s1899_s26   ;;  %s412_s15 = sand.u32 (!%p371_p13), 1, %s1891_s24  }
  0x35   : > { %374 = sbr.rel (%p371_p13) target bundleno = 945 (0x3b1), region = 85  ;;  %s1446_s17 = sshll.u32 (!%p371_p13), %s377_s12, 6 }
  0x36   : > { %s1447_s18 = sshll.u32 (!%p371_p13), %s412_s15, 6  ;;  %s1448_s21 = sshll.u32 (!%p371_p13), %s1911_s29, 4 }
  0x37   : > { %p421_p0 = scmp.lt.s32.totalorder (!%p371_p13), %s1907_s28, 2  ;;  %p416_p1 = scmp.lt.s32.totalorder (!%p371_p13), %s1448_s21, 31 }
  0x38   : > { %s2081_s24 = scalar_lea.vmem (!%p371_p13), [#allocation3], %s1446_s17  ;;  %s2083_s26 = scalar_lea.vmem (!%p371_p13), [#allocation4], %s1447_s18 }
  0x39   : > { %p1450_p2 = scmp.ne.s32.totalorder (!%p371_p13), %s1907_s28, 0 }
  0x3c   : > { %s2070_s22 = scalar_select %p421_p0, %s1907_s28, 2 }
  0x3d   : > { %s2469_s21 = smov (!%p416_p1, %s1448_s21), 31  ;;  %429 = sbr.rel (%p1450_p2) target bundleno = 673 (0x2a1), region = 93 }
  0x3e   : > { %s423_s10 = scalar_lea.vmem %s2442_s6, %s2070_s22  ;;  %s1449_s14 = sshll.u32 %s2469_s21, 2  ;;  %v1765_v16 = vld [vmem:[%s2437_s1] sm:$0xff] (!%p1450_p2)   ;;  %v1766_v17 = vld [vmem:[%s2437_s1 + $0x8] sm:$0xff] (!%p1450_p2)   ;;  %v1767_v18 = vld [vmem:[%s2437_s1 + $0x10] sm:$0xff] (!%p1450_p2)  }
  0x3f   : > { %s2079_s8 = scalar_lea.vmem %s2436_s0, %s1449_s14  ;;  %1596 = vmatprep.subr.bf16.mxu0 (!%p1450_p2), %v1765_v16  ;;  %1660 = vmatprep.subr.bf16.mxu1 (!%p1450_p2), %v1765_v16  ;;  %v1768_v19 = vld [vmem:[%s2437_s1 + $0x18] sm:$0xff] (!%p1450_p2)   ;;  %v1769_v22 = vld [vmem:[%s2437_s1 + $0x20] sm:$0xff] (!%p1450_p2)   ;;  %v1770_v23 = vld [vmem:[%s2437_s1 + $0x28] sm:$0xff] (!%p1450_p2)  }
  0x40   : > { %1597 = vmatpush3.bf16.msra.mxu0 (!%p1450_p2), %v1765_v16  ;;  %1668 = vmatpush3.bf16.msra.mxu1 (!%p1450_p2), %v1765_v16  ;;  %v1773_v20 = vld [vmem:[%s2079_s8] sm:$0xff] (!%p1450_p2)   ;;  %v1771_v24 = vld [vmem:[%s2437_s1 + $0x30] sm:$0xff] (!%p1450_p2)   ;;  %v1772_v25 = vld [vmem:[%s2437_s1 + $0x38] sm:$0xff] (!%p1450_p2)  }
  0x41   : > { %1598 = vmatprep.subr.bf16.mxu0 (!%p1450_p2), %v1766_v17  ;;  %1661 = vmatprep.subr.bf16.mxu1 (!%p1450_p2), %v1766_v17  ;;  %v1774_v21 = vld [vmem:[%s2079_s8 + $0x20] sm:$0xff] (!%p1450_p2)   ;;  %v1775_v26 = vld [vmem:[%s2079_s8 + $0x8] sm:$0xff] (!%p1450_p2)   ;;  %v1777_v28 = vld [vmem:[%s2079_s8 + $0x10] sm:$0xff] (!%p1450_p2)  }
  0x42   : > { %1612 = vmatprep.mubr.bf16.mxu0 (!%p1450_p2), %v1773_v20  ;;  %1620 = vmatprep.mubr.bf16.mxu1 (!%p1450_p2), %v1774_v21  ;;  %v1776_v27 = vld [vmem:[%s2079_s8 + $0x28] sm:$0xff] (!%p1450_p2)   ;;  %v1779_v29 = vld [vmem:[%s2079_s8 + $0x30] sm:$0xff] (!%p1450_p2)   ;;  %v1778_v30 = vld [vmem:[%s2079_s8 + $0x18] sm:$0xff] (!%p1450_p2)  }
  0x43   : > { %v1780_v31 = vld [vmem:[%s2079_s8 + $0x38] sm:$0xff] (!%p1450_p2)   ;;  %v2121_v32 = vld [vmem:[%s2438_s2] ss:$0 sm:$0xff] (!%p1450_p2) }
  0x44   : > { %1599 = vmatpush3.bf16.msra.mxu0 %v1766_v17  ;;  %1669 = vmatpush3.bf16.msra.mxu1 %v1766_v17 }
  0x45   : > { %1600 = vmatprep.subr.bf16.mxu0 %v1767_v18  ;;  %1662 = vmatprep.subr.bf16.mxu1 %v1767_v18 }
  0x48   : > { %1601 = vmatpush3.bf16.msra.mxu0 %v1767_v18  ;;  %1670 = vmatpush3.bf16.msra.mxu1 %v1767_v18 }
  0x49   : > { %1602 = vmatprep.subr.bf16.mxu0 %v1768_v19  ;;  %1663 = vmatprep.subr.bf16.mxu1 %v1768_v19 }
  0x4c   : > { %1603 = vmatpush3.bf16.msra.mxu0 %v1768_v19  ;;  %1671 = vmatpush3.bf16.msra.mxu1 %v1768_v19 }
  0x4d   : > { %1604 = vmatprep.subr.bf16.mxu0 %v1769_v22  ;;  %1664 = vmatprep.subr.bf16.mxu1 %v1769_v22 }
  0x50   : > { %1605 = vmatpush3.bf16.msra.mxu0 %v1769_v22  ;;  %1672 = vmatpush3.bf16.msra.mxu1 %v1769_v22 }
  0x51   : > { %1606 = vmatprep.subr.bf16.mxu0 %v1770_v23  ;;  %1665 = vmatprep.subr.bf16.mxu1 %v1770_v23 }
  0x54   : > { %1607 = vmatpush3.bf16.msra.mxu0 %v1770_v23  ;;  %1673 = vmatpush3.bf16.msra.mxu1 %v1770_v23 }
  0x55   : > { %1608 = vmatprep.subr.bf16.mxu0 %v1771_v24  ;;  %1666 = vmatprep.subr.bf16.mxu1 %v1771_v24 }
  0x58   : > { %1609 = vmatpush3.bf16.msra.mxu0 %v1771_v24  ;;  %1674 = vmatpush3.bf16.msra.mxu1 %v1771_v24 }
  0x59   : > { %1610 = vmatprep.subr.bf16.mxu0 %v1772_v25  ;;  %1667 = vmatprep.subr.bf16.mxu1 %v1772_v25 }
  0x5c   : > { %1611 = vmatpush3.bf16.msra.mxu0 %v1772_v25  ;;  %1675 = vmatpush3.bf16.msra.mxu1 %v1772_v25 }
  0x5f   : > { %1613 = vmatmul.mubr.bf16.vlgmr.msra.gmra.mrb[0].mxu0 %v1775_v26  ;;  %1621 = vmatmul.mubr.bf16.vlgmr.msra.gmra.mrb[0].mxu1 %v1776_v27 }
  0x60   : > { %1616 = vmatprep.mubr.bf16.mxu0 %v1777_v28  ;;  %1624 = vmatprep.mubr.bf16.mxu1 %v1779_v29 }
  0x67   : > { %1617 = vmatmul.mubr.bf16.gmra.mrb[4].mxu0 %v1778_v30  ;;  %1625 = vmatmul.mubr.bf16.gmra.mrb[4].mxu1 %v1780_v31 }
 0x132   : > { %v1614_v33 = vpop.f32.mrb[0].mxu0  ;;  %v1622_v34 = vpop.f32.mrb[0].mxu1 }
 0x133   : > { %v608_v35 = vadd.f32 %v1614_v33, %v2121_v32  ;;  %v640_v36 = vadd.f32 %v1622_v34, %v2121_v32  ;;  %v599_v37 = vpop.f32.mrb[1].mxu0  ;;  %v631_v38 = vpop.f32.mrb[1].mxu1 }
 0x134   : > { %v600_v39 = vadd.f32 %v2121_v32, %v599_v37  ;;  %v2127_v40 = vadd.f32 %v2121_v32, %v631_v38  ;;  %v1615_v41 = vpop.f32.mrb[2].mxu0  ;;  %v1623_v42 = vpop.f32.mrb[2].mxu1 }
 0x135   : > { %v680_v43 = vmul.f32 0.70710677, %v608_v35  ;;  %v688_v44 = vmul.f32 0.70710677, %v640_v36  ;;  %v611_v46 = vadd.f32 %v1615_v41, %v2121_v32  ;;  %v2131_v47 = vadd.f32 %v1623_v42, %v2121_v32  ;;  %v602_v48 = vpop.f32.mrb[3].mxu0  ;;  %v634_v49 = vpop.f32.mrb[3].mxu1 }
 0x136   : > { %v678_v45 = vmul.f32 0.70710677, %v600_v39  ;;  %v686_v50 = vmul.f32 0.70710677, %v2127_v40  ;;  %v2135_v51 = vadd.f32 %v2121_v32, %v602_v48  ;;  %v2138_v53 = vadd.f32 %v2121_v32, %v634_v49 }
 0x137   : > { %1781 = verf.f32 %v680_v43  ;;  %v681_v52 = vmul.f32 0.70710677, %v611_v46  ;;  %v689_v54 = vmul.f32 0.70710677, %v2131_v47  ;;  %v664_v10 = vmul.f32 0.5, %v608_v35 }
 0x138   : > { %1783 = verf.f32 %v688_v44  ;;  %v679_v58 = vmul.f32 0.70710677, %v2135_v51  ;;  %v687_v62 = vmul.f32 0.70710677, %v2138_v53  ;;  %v672_v11 = vmul.f32 0.5, %v640_v36 }
 0x139   : > { %1785 = verf.f32 %v678_v45  ;;  %v662_v25 = vmul.f32 0.5, %v600_v39  ;;  %v665_v26 = vmul.f32 0.5, %v611_v46  ;;  %v670_v38 = vmul.f32 0.5, %v2127_v40 }
 0x13a   : > { %v1618_v55 = vpop.f32.mrb[4].mxu0  ;;  %1787 = verf.f32 %v681_v52  ;;  %v1626_v57 = vpop.f32.mrb[4].mxu1  ;;  %v673_v39 = vmul.f32 0.5, %v2131_v47  ;;  %v663_v40 = vmul.f32 0.5, %v2135_v51  ;;  %v671_v47 = vmul.f32 0.5, %v2138_v53 }
 0x13b   : > { %v615_v56 = vpop.f32.mrb[5].mxu0  ;;  %1789 = verf.f32 %v686_v50  ;;  %v2143_v59 = vadd.f32 %v1618_v55, %v2121_v32  ;;  %v647_v61 = vpop.f32.mrb[5].mxu1  ;;  %v656_v27 = vadd.f32 %v1626_v57, %v2121_v32 }
 0x13c   : > { %v1619_v60 = vpop.f32.mrb[6].mxu0  ;;  %1791 = verf.f32 %v689_v54  ;;  %v1627_v1 = vpop.f32.mrb[6].mxu1  ;;  %v2150_v3 = vadd.f32 %v2121_v32, %v615_v56  ;;  %v2159_v13 = vadd.f32 %v2121_v32, %v647_v61 }
 0x13d   : > { %v2147_v63 = vadd.f32 %v1619_v60, %v2121_v32  ;;  %v618_v0 = vpop.f32.mrb[7].mxu0  ;;  %v650_v2 = vpop.f32.mrb[7].mxu1  ;;  %1793 = verf.f32 %v679_v58  ;;  %v684_v4 = vmul.f32 0.70710677, %v2143_v59  ;;  %v659_v29 = vadd.f32 %v1627_v1, %v2121_v32 }
 0x13e   : > { %1795 = verf.f32 %v687_v62  ;;  %v2155_v7 = vadd.f32 %v2121_v32, %v618_v0  ;;  %v682_v12 = vmul.f32 0.70710677, %v2150_v3  ;;  %v2163_v18 = vadd.f32 %v2121_v32, %v650_v2 }
 0x13f   : > { %v685_v6 = vmul.f32 0.70710677, %v2147_v63  ;;  %1797 = verf.f32 %v684_v4  ;;  %v690_v28 = vmul.f32 0.70710677, %v2159_v13  ;;  %v692_v41 = vmul.f32 0.70710677, %v656_v27 }
 0x140   : > { %v683_v17 = vmul.f32 0.70710677, %v2155_v7  ;;  %v691_v30 = vmul.f32 0.70710677, %v2163_v18  ;;  %v693_v32 = vmul.f32 0.70710677, %v659_v29 }
 0x141   : > { %v1782_v5 = vpop.eup %1781  ;;  %1799 = verf.f32 %v685_v6  ;;  %v668_v57 = vmul.f32 0.5, %v2143_v59  ;;  %v669_v51 = vmul.f32 0.5, %v2147_v63  ;;  %v666_v1 = vmul.f32 0.5, %v2150_v3 }
 0x142   : > { %v1784_v8 = vpop.eup %1783  ;;  %v712_v15 = vadd.f32 1.0, %v1782_v5  ;;  %1801 = verf.f32 %v682_v12  ;;  %v667_v2 = vmul.f32 0.5, %v2155_v7  ;;  %v674_v59 = vmul.f32 0.5, %v2159_v13 }
 0x143   : > { %v1786_v9 = vpop.eup %1785  ;;  %v720_v14 = vadd.f32 1.0, %v1784_v8  ;;  %1803 = verf.f32 %v683_v17  ;;  %v675_v63 = vmul.f32 0.5, %v2163_v18  ;;  %v676_v3 = vmul.f32 0.5, %v656_v27 }
 0x144   : > { %v1788_v16 = vpop.eup %1787  ;;  %v2167_v21 = vmul.f32 %v712_v15, %v664_v10  ;;  %v710_v23 = vadd.f32 1.0, %v1786_v9  ;;  %1805 = verf.f32 %v690_v28  ;;  %v677_v7 = vmul.f32 0.5, %v659_v29 }
 0x145   : > { %v1790_v19 = vpop.eup %1789  ;;  %v2165_v20 = vmul.f32 %v720_v14, %v672_v11  ;;  %v713_v22 = vadd.f32 1.0, %v1788_v16  ;;  %1807 = verf.f32 %v691_v30 }
 0x146   : > { %v1792_v24 = vpop.eup %1791  ;;  %746 = vadd.xlane.f32.xlu1 %v2167_v21  ;;  %v2177_v34 = vmul.f32 %v710_v23, %v662_v25  ;;  %v718_v36 = vadd.f32 1.0, %v1790_v19  ;;  %1809 = verf.f32 %v692_v41 }
 0x147   : > { %762 = vadd.xlane.f32.xlu0 %v2165_v20  ;;  %v1794_v31 = vpop.eup %1793  ;;  %v2175_v33 = vmul.f32 %v713_v22, %v665_v26  ;;  %v721_v35 = vadd.f32 1.0, %v1792_v24  ;;  %1811 = verf.f32 %v693_v32 }
 0x148   : > { %v1796_v37 = vpop.eup %1795  ;;  %v2185_v44 = vmul.f32 %v718_v36, %v670_v38  ;;  %v711_v46 = vadd.f32 1.0, %v1794_v31 }
 0x149   : > { %v1798_v42 = vpop.eup %1797  ;;  %v2183_v43 = vmul.f32 %v721_v35, %v673_v39  ;;  %v719_v45 = vadd.f32 1.0, %v1796_v37 }
 0x14a   : > { %748 = vadd.xlane.f32.xlu1 %v2175_v33  ;;  %v2193_v52 = vmul.f32 %v711_v46, %v663_v40  ;;  %v716_v55 = vadd.f32 1.0, %v1798_v42 }
 0x14b   : > { %742 = vadd.xlane.f32.xlu0 %v2177_v34  ;;  %v1800_v48 = vpop.eup %1799  ;;  %v2191_v50 = vmul.f32 %v719_v45, %v671_v47 }
 0x14c   : > { %v1802_v49 = vpop.eup %1801  ;;  %v717_v54 = vadd.f32 1.0, %v1800_v48  ;;  %v2201_v60 = vmul.f32 %v716_v55, %v668_v57 }
 0x14d   : > { %v1804_v56 = vpop.eup %1803  ;;  %v714_v62 = vadd.f32 1.0, %v1802_v49 }
 0x14e   : > { %764 = vadd.xlane.f32.xlu1 %v2183_v43  ;;  %v1806_v53 = vpop.eup %1805  ;;  %v2199_v58 = vmul.f32 %v717_v54, %v669_v51  ;;  %v715_v61 = vadd.f32 1.0, %v1804_v56 }
 0x14f   : > { %758 = vadd.xlane.f32.xlu0 %v2185_v44  ;;  %v1808_v0 = vpop.eup %1807  ;;  %v2211_v6 = vmul.f32 %v714_v62, %v666_v1  ;;  %v722_v9 = vadd.f32 1.0, %v1806_v53 }
 0x150   : > { %v1810_v4 = vpop.eup %1809  ;;  %v2209_v5 = vmul.f32 %v715_v61, %v667_v2  ;;  %v723_v8 = vadd.f32 1.0, %v1808_v0 }
 0x151   : > { %v1812_v10 = vpop.eup %1811  ;;  %v2217_v12 = vmul.f32 %v722_v9, %v674_v59  ;;  %v724_v14 = vadd.f32 1.0, %v1810_v4 }
 0x152   : > { %760 = vadd.xlane.f32.xlu1 %v2191_v50  ;;  %v2215_v11 = vmul.f32 %v723_v8, %v675_v63  ;;  %v725_v13 = vadd.f32 1.0, %v1812_v10 }
 0x153   : > { %744 = vadd.xlane.f32.xlu0 %v2193_v52  ;;  %v2223_v16 = vmul.f32 %v724_v14, %v676_v3 }
 0x154   : > { %v2221_v15 = vmul.f32 %v725_v13, %v677_v7 }
 0x156   : > { %756 = vadd.xlane.f32.xlu1 %v2199_v58 }
 0x157   : > { %754 = vadd.xlane.f32.xlu0 %v2201_v60 }
 0x15a   : > { %752 = vadd.xlane.f32.xlu1 %v2209_v5 }
 0x15b   : > { %750 = vadd.xlane.f32.xlu0 %v2211_v6 }
 0x15e   : > { %768 = vadd.xlane.f32.xlu1 %v2215_v11 }
 0x15f   : > { %766 = vadd.xlane.f32.xlu0 %v2217_v12 }
 0x162   : > { %772 = vadd.xlane.f32.xlu1 %v2221_v15 }
 0x163   : > { %770 = vadd.xlane.f32.xlu0 %v2223_v16 }
 0x1d3   : > { %v747_v18 = vpop.xlane.xlu1 %746 }
 0x1d4   : > { %v763_v17 = vpop.xlane.xlu0 %762  ;;  %v777_v22 = vmul.f32 0.0078125, %v747_v18 }
 0x1d5   : > { %v785_v19 = vmul.f32 0.0078125, %v763_v17 }
 0x1d6   : > { %v2228_v23 = vsub.f32 %v2167_v21, %v777_v22 }
 0x1d7   : > { %v749_v24 = vpop.xlane.xlu1 %748  ;;  %v2231_v26 = vsub.f32 %v2165_v20, %v785_v19 }
 0x1d8   : > { %v743_v25 = vpop.xlane.xlu0 %742  ;;  %v778_v27 = vmul.f32 0.0078125, %v749_v24  ;;  %v809_v29 = vmul.f32 %v2228_v23, %v2228_v23 }
 0x1d9   : > { %v775_v28 = vmul.f32 0.0078125, %v743_v25  ;;  %v817_v38 = vmul.f32 %v2231_v26, %v2231_v26 }
 0x1da   : > { %v2236_v30 = vsub.f32 %v2175_v33, %v778_v27  ;;  %827 = vadd.xlane.f32.xlu0 %v809_v29 }
 0x1db   : > { %v2239_v31 = vsub.f32 %v2177_v34, %v775_v28  ;;  %v765_v35 = vpop.xlane.xlu1 %764 }
 0x1dc   : > { %v759_v21 = vpop.xlane.xlu0 %758  ;;  %v786_v36 = vmul.f32 0.0078125, %v765_v35  ;;  %v810_v20 = vmul.f32 %v2236_v30, %v2236_v30 }
 0x1dd   : > { %v783_v37 = vmul.f32 0.0078125, %v759_v21  ;;  %v807_v34 = vmul.f32 %v2239_v31, %v2239_v31 }
 0x1de   : > { %v2246_v39 = vsub.f32 %v2183_v43, %v786_v36  ;;  %829 = vadd.xlane.f32.xlu1 %v810_v20  ;;  %843 = vadd.xlane.f32.xlu0 %v817_v38 }
 0x1df   : > { %v761_v33 = vpop.xlane.xlu1 %760  ;;  %v2251_v32 = vsub.f32 %v2185_v44, %v783_v37 }
 0x1e0   : > { %v745_v41 = vpop.xlane.xlu0 %744  ;;  %v784_v42 = vmul.f32 0.0078125, %v761_v33  ;;  %v818_v46 = vmul.f32 %v2246_v39, %v2246_v39 }
 0x1e1   : > { %v776_v45 = vmul.f32 0.0078125, %v745_v41  ;;  %v815_v44 = vmul.f32 %v2251_v32, %v2251_v32 }
 0x1e2   : > { %845 = vadd.xlane.f32.xlu1 %v818_v46  ;;  %823 = vadd.xlane.f32.xlu0 %v807_v34  ;;  %v2259_v43 = vsub.f32 %v2191_v50, %v784_v42 }
 0x1e3   : > { %v2256_v48 = vsub.f32 %v2193_v52, %v776_v45  ;;  %v757_v40 = vpop.xlane.xlu1 %756 }
 0x1e4   : > { %v755_v47 = vpop.xlane.xlu0 %754  ;;  %v782_v49 = vmul.f32 0.0078125, %v757_v40  ;;  %v816_v50 = vmul.f32 %v2259_v43, %v2259_v43 }
 0x1e5   : > { %v781_v54 = vmul.f32 0.0078125, %v755_v47  ;;  %v808_v55 = vmul.f32 %v2256_v48, %v2256_v48 }
 0x1e6   : > { %839 = vadd.xlane.f32.xlu0 %v815_v44  ;;  %v2271_v51 = vsub.f32 %v2199_v58, %v782_v49  ;;  %v2311_v44 = vld [vmem:[%s2439_s3] ss:$0 sm:$0xff] }
 0x1e7   : > { %v2266_v56 = vsub.f32 %v2201_v60, %v781_v54  ;;  %825 = vadd.xlane.f32.xlu1 %v808_v55  ;;  %v753_v52 = vpop.xlane.xlu1 %752 }
 0x1e8   : > { %v751_v57 = vpop.xlane.xlu0 %750  ;;  %v780_v53 = vmul.f32 0.0078125, %v753_v52  ;;  %v814_v58 = vmul.f32 %v2271_v51, %v2271_v51 }
 0x1e9   : > { %v779_v61 = vmul.f32 0.0078125, %v751_v57  ;;  %v813_v62 = vmul.f32 %v2266_v56, %v2266_v56 }
 0x1ea   : > { %v2279_v60 = vsub.f32 %v2209_v5, %v780_v53 }
 0x1eb   : > { %v2276_v0 = vsub.f32 %v2211_v6, %v779_v61  ;;  %841 = vadd.xlane.f32.xlu1 %v816_v50  ;;  %835 = vadd.xlane.f32.xlu0 %v813_v62  ;;  %v769_v1 = vpop.xlane.xlu1 %768 }
 0x1ec   : > { %v767_v2 = vpop.xlane.xlu0 %766  ;;  %v788_v59 = vmul.f32 0.0078125, %v769_v1  ;;  %v812_v5 = vmul.f32 %v2279_v60, %v2279_v60 }
 0x1ed   : > { %v787_v63 = vmul.f32 0.0078125, %v767_v2  ;;  %v811_v4 = vmul.f32 %v2276_v0, %v2276_v0 }
 0x1ee   : > { %v2291_v10 = vsub.f32 %v2215_v11, %v788_v59  ;;  %v2318_v59 = vld [vmem:[%s2440_s4] ss:$0 sm:$0xff] }
 0x1ef   : > { %v2286_v8 = vsub.f32 %v2217_v12, %v787_v63  ;;  %837 = vadd.xlane.f32.xlu1 %v814_v58  ;;  %831 = vadd.xlane.f32.xlu0 %v811_v4  ;;  %v773_v6 = vpop.xlane.xlu1 %772 }
 0x1f0   : > { %v771_v9 = vpop.xlane.xlu0 %770  ;;  %v790_v3 = vmul.f32 0.0078125, %v773_v6  ;;  %v820_v17 = vmul.f32 %v2291_v10, %v2291_v10 }
 0x1f1   : > { %v789_v7 = vmul.f32 0.0078125, %v771_v9  ;;  %v819_v13 = vmul.f32 %v2286_v8, %v2286_v8 }
 0x1f2   : > { %v2299_v12 = vsub.f32 %v2221_v15, %v790_v3 }
 0x1f3   : > { %v2296_v14 = vsub.f32 %v2223_v16, %v789_v7  ;;  %833 = vadd.xlane.f32.xlu1 %v812_v5  ;;  %847 = vadd.xlane.f32.xlu0 %v819_v13 }
 0x1f4   : > { %v822_v18 = vmul.f32 %v2299_v12, %v2299_v12 }
 0x1f5   : > { %v821_v11 = vmul.f32 %v2296_v14, %v2296_v14 }
 0x1f7   : > { %849 = vadd.xlane.f32.xlu1 %v820_v17  ;;  %851 = vadd.xlane.f32.xlu0 %v821_v11 }
 0x1fb   : > { %853 = vadd.xlane.f32.xlu1 %v822_v18 }
 0x267   : > { %v828_v19 = vpop.xlane.xlu0 %827 }
 0x268   : > { %v857_v16 = vmul.f32 0.0078125, %v828_v19 }
 0x26a   : > { %v873_v22 = vadd.f32 1e-05, %v857_v16 }
 0x26b   : > { %v830_v24 = vpop.xlane.xlu1 %829  ;;  %v844_v25 = vpop.xlane.xlu0 %843 }
 0x26c   : > { %1813 = vrsqrt.f32 %v873_v22  ;;  %v858_v15 = vmul.f32 0.0078125, %v830_v24  ;;  %v865_v27 = vmul.f32 0.0078125, %v844_v25 }
 0x26e   : > { %v874_v28 = vadd.f32 1e-05, %v858_v15  ;;  %v881_v29 = vadd.f32 1e-05, %v865_v27 }
 0x26f   : > { %v846_v35 = vpop.xlane.xlu1 %845  ;;  %v824_v21 = vpop.xlane.xlu0 %823 }
 0x270   : > { %1815 = vrsqrt.f32 %v874_v28  ;;  %v866_v36 = vmul.f32 0.0078125, %v846_v35  ;;  %v855_v37 = vmul.f32 0.0078125, %v824_v21 }
 0x271   : > { %1817 = vrsqrt.f32 %v881_v29 }
 0x272   : > { %v882_v20 = vadd.f32 1e-05, %v866_v36  ;;  %v871_v38 = vadd.f32 1e-05, %v855_v37 }
 0x273   : > { %v840_v41 = vpop.xlane.xlu0 %839 }
 0x274   : > { %v826_v33 = vpop.xlane.xlu1 %825  ;;  %1819 = vrsqrt.f32 %v882_v20  ;;  %v863_v42 = vmul.f32 0.0078125, %v840_v41 }
 0x275   : > { %v856_v34 = vmul.f32 0.0078125, %v826_v33  ;;  %1821 = vrsqrt.f32 %v871_v38 }
 0x276   : > { %v1814_v45 = vpop.eup %1813  ;;  %v879_v40 = vadd.f32 1e-05, %v863_v42 }
 0x277   : > { %v872_v46 = vadd.f32 1e-05, %v856_v34  ;;  %v905_v47 = vmul.f32 %v1814_v45, %v2228_v23 }
 0x278   : > { %v842_v49 = vpop.xlane.xlu1 %841  ;;  %v836_v54 = vpop.xlane.xlu0 %835 }
 0x279   : > { %1823 = vrsqrt.f32 %v872_v46  ;;  %v864_v55 = vmul.f32 0.0078125, %v842_v49  ;;  %v861_v52 = vmul.f32 0.0078125, %v836_v54  ;;  %v928_v62 = vmul.f32 %v2311_v44, %v905_v47 }
 0x27a   : > { %1825 = vrsqrt.f32 %v879_v40  ;;  %v1816_v57 = vpop.eup %1815 }
 0x27b   : > { %v880_v50 = vadd.f32 1e-05, %v864_v55  ;;  %v877_v53 = vadd.f32 1e-05, %v861_v52  ;;  %v1818_v61 = vpop.eup %1817  ;;  %v906_v1 = vmul.f32 %v1816_v57, %v2236_v30  ;;  %v951_v30 = vadd.f32 %v2318_v59, %v928_v62 }
 0x27c   : > { %v838_v23 = vpop.xlane.xlu1 %837  ;;  %v832_v2 = vpop.xlane.xlu0 %831  ;;  %v913_v63 = vmul.f32 %v1818_v61, %v2231_v26 }
 0x27d   : > { %1827 = vrsqrt.f32 %v880_v50  ;;  %v862_v58 = vmul.f32 0.0078125, %v838_v23  ;;  %v859_v4 = vmul.f32 0.0078125, %v832_v2  ;;  %v929_v6 = vmul.f32 %v2311_v44, %v906_v1 }
 0x27e   : > { %1829 = vrsqrt.f32 %v877_v53  ;;  %v1820_v9 = vpop.eup %1819  ;;  %v936_v17 = vmul.f32 %v2311_v44, %v913_v63 }
 0x27f   : > { %v878_v5 = vadd.f32 1e-05, %v862_v58  ;;  %v875_v3 = vadd.f32 1e-05, %v859_v4  ;;  %v1822_v7 = vpop.eup %1821  ;;  %v952_v13 = vadd.f32 %v2318_v59, %v929_v6  ;;  %v914_v11 = vmul.f32 %v1820_v9, %v2246_v39 }
 0x280   : > { %v834_v18 = vpop.xlane.xlu1 %833  ;;  %v848_v26 = vpop.xlane.xlu0 %847  ;;  %v903_v19 = vmul.f32 %v1822_v7, %v2239_v31  ;;  %v959_v35 = vadd.f32 %v2318_v59, %v936_v17 }
 0x281   : > { %1831 = vrsqrt.f32 %v878_v5  ;;  %v860_v16 = vmul.f32 0.0078125, %v834_v18  ;;  %v966_v22 = vpack.c.bf16 %v952_v13, %v951_v30  ;;  %v937_v24 = vmul.f32 %v2311_v44, %v914_v11 }
 0x282   : > { %1833 = vrsqrt.f32 %v875_v3  ;;  %v867_v25 = vmul.f32 0.0078125, %v848_v26  ;;  %v926_v27 = vmul.f32 %v2311_v44, %v903_v19 }
 0x283   : > { %v1824_v15 = vpop.eup %1823  ;;  %v876_v28 = vadd.f32 1e-05, %v860_v16  ;;  %974 = vst [vmem:[#allocation2 + $0x8] sm:$0xff] %v966_v22  ;;  %v960_v39 = vadd.f32 %v2318_v59, %v937_v24 }
 0x284   : > { %v1826_v29 = vpop.eup %1825  ;;  %v904_v21 = vmul.f32 %v1824_v15, %v2256_v48  ;;  %v883_v31 = vadd.f32 1e-05, %v867_v25  ;;  %v850_v36 = vpop.xlane.xlu1 %849  ;;  %v949_v45 = vadd.f32 %v2318_v59, %v926_v27 }
 0x285   : > { %v852_v37 = vpop.xlane.xlu0 %851  ;;  %v911_v20 = vmul.f32 %v1826_v29, %v2251_v32  ;;  %1835 = vrsqrt.f32 %v876_v28  ;;  %v868_v38 = vmul.f32 0.0078125, %v850_v36  ;;  %v970_v33 = vpack.c.bf16 %v960_v39, %v959_v35 }
 0x286   : > { %v927_v41 = vmul.f32 %v2311_v44, %v904_v21  ;;  %1837 = vrsqrt.f32 %v883_v31  ;;  %v869_v34 = vmul.f32 0.0078125, %v852_v37 }
 0x287   : > { %v1828_v42 = vpop.eup %1827  ;;  %v884_v46 = vadd.f32 1e-05, %v868_v38  ;;  %978 = vst [vmem:[#allocation2 + $0x28] sm:$0xff] %v970_v33  ;;  %v934_v47 = vmul.f32 %v2311_v44, %v911_v20 }
 0x288   : > { %v1830_v40 = vpop.eup %1829  ;;  %v950_v48 = vadd.f32 %v2318_v59, %v927_v41  ;;  %v912_v49 = vmul.f32 %v1828_v42, %v2259_v43  ;;  %v885_v32 = vadd.f32 1e-05, %v869_v34  ;;  %v854_v54 = vpop.xlane.xlu1 %853 }
 0x289   : > { %v909_v55 = vmul.f32 %v1830_v40, %v2266_v56  ;;  %1839 = vrsqrt.f32 %v884_v46  ;;  %v870_v52 = vmul.f32 0.0078125, %v854_v54  ;;  %v957_v1 = vadd.f32 %v2318_v59, %v934_v47 }
 0x28a   : > { %v965_v57 = vpack.c.bf16 %v950_v48, %v949_v45  ;;  %v935_v50 = vmul.f32 %v2311_v44, %v912_v49  ;;  %1841 = vrsqrt.f32 %v885_v32 }
 0x28b   : > { %v1832_v53 = vpop.eup %1831  ;;  %v886_v61 = vadd.f32 1e-05, %v870_v52  ;;  %v932_v43 = vmul.f32 %v2311_v44, %v909_v55 }
 0x28c   : > { %v1834_v62 = vpop.eup %1833  ;;  %973 = vst [vmem:[#allocation2] sm:$0xff] %v965_v57  ;;  %v958_v23 = vadd.f32 %v2318_v59, %v935_v50  ;;  %v910_v2 = vmul.f32 %v1832_v53, %v2271_v51 }
 0x28d   : > { %v907_v56 = vmul.f32 %v1834_v62, %v2276_v0  ;;  %1843 = vrsqrt.f32 %v886_v61  ;;  %v955_v9 = vadd.f32 %v2318_v59, %v932_v43 }
 0x28e   : > { %v969_v63 = vpack.c.bf16 %v958_v23, %v957_v1  ;;  %v933_v58 = vmul.f32 %v2311_v44, %v910_v2 }
 0x28f   : > { %v1836_v4 = vpop.eup %1835  ;;  %v930_v3 = vmul.f32 %v2311_v44, %v907_v56 }
 0x290   : > { %v1838_v6 = vpop.eup %1837  ;;  %977 = vst [vmem:[#allocation2 + $0x20] sm:$0xff] %v969_v63  ;;  %v956_v5 = vadd.f32 %v2318_v59, %v933_v58  ;;  %v908_v7 = vmul.f32 %v1836_v4, %v2279_v60 }
 0x291   : > { %v915_v30 = vmul.f32 %v1838_v6, %v2286_v8  ;;  %v953_v11 = vadd.f32 %v2318_v59, %v930_v3 }
 0x292   : > { %v968_v51 = vpack.c.bf16 %v956_v5, %v955_v9  ;;  %v931_v0 = vmul.f32 %v2311_v44, %v908_v7 }
 0x293   : > { %v1840_v13 = vpop.eup %1839  ;;  %v938_v26 = vmul.f32 %v2311_v44, %v915_v30 }
 0x294   : > { %v1842_v17 = vpop.eup %1841  ;;  %976 = vst [vmem:[#allocation2 + $0x18] sm:$0xff] %v968_v51  ;;  %v954_v18 = vadd.f32 %v2318_v59, %v931_v0  ;;  %v916_v19 = vmul.f32 %v1840_v13, %v2291_v10 }
 0x295   : > { %v917_v16 = vmul.f32 %v1842_v17, %v2296_v14  ;;  %v961_v24 = vadd.f32 %v2318_v59, %v938_v26 }
 0x296   : > { %v967_v22 = vpack.c.bf16 %v954_v18, %v953_v11  ;;  %v939_v60 = vmul.f32 %v2311_v44, %v916_v19 }
 0x297   : > { %v1844_v8 = vpop.eup %1843  ;;  %v940_v15 = vmul.f32 %v2311_v44, %v917_v16 }
 0x298   : > { %975 = vst [vmem:[#allocation2 + $0x10] sm:$0xff] %v967_v22  ;;  %v962_v25 = vadd.f32 %v2318_v59, %v939_v60  ;;  %v918_v27 = vmul.f32 %v1844_v8, %v2299_v12 }
 0x299   : > { %v963_v10 = vadd.f32 %v2318_v59, %v940_v15 }
 0x29a   : > { %v971_v28 = vpack.c.bf16 %v962_v25, %v961_v24  ;;  %v941_v29 = vmul.f32 %v2311_v44, %v918_v27 }
 0x29c   : > { %979 = vst [vmem:[#allocation2 + $0x30] sm:$0xff] %v971_v28  ;;  %v964_v14 = vadd.f32 %v2318_v59, %v941_v29 }
 0x29e   : > { %v972_v35 = vpack.c.bf16 %v964_v14, %v963_v10 }
 0x2a0   : > { %980 = vst [vmem:[#allocation2 + $0x38] sm:$0xff] %v972_v35 }
 0x2a1 PF: > { %v1845_v39 = vld [vmem:[%s2081_s24] sm:$0xff]   ;;  %v1846_v21 = vld [vmem:[%s2081_s24 + $0x8] sm:$0xff]   ;;  %v1847_v12 = vld [vmem:[%s2081_s24 + $0x10] sm:$0xff]   ;;  %s1692_s22 = smul.u32 (%p2032_p9), 48, %s1911_s29 }
 0x2a2   : > { %1628 = vmatprep.subr.bf16.mxu0 %v1845_v39  ;;  %1676 = vmatprep.subr.bf16.mxu1 %v1845_v39  ;;  %v1848_v44 = vld [vmem:[%s2081_s24 + $0x18] sm:$0xff]   ;;  %v981_v59 = vld [vmem:[#allocation2] sm:$0xff]  ;;  %v1850_v37 = vld [vmem:[%s2081_s24 + $0x28] sm:$0xff]  }
 0x2a3   : > { %1629 = vmatpush3.bf16.msra.mxu0 %v1845_v39  ;;  %1684 = vmatpush3.bf16.msra.mxu1 %v1845_v39  ;;  %v985_v31 = vld [vmem:[#allocation2 + $0x20] sm:$0xff]  ;;  %v1851_v20 = vld [vmem:[%s2081_s24 + $0x30] sm:$0xff]   ;;  %v1852_v38 = vld [vmem:[%s2081_s24 + $0x38] sm:$0xff]   ;;  %s1246_s19 = sadd.s32 (%p2032_p9), %s1907_s28, %s1692_s22 }
 0x2a4   : > { %1630 = vmatprep.subr.bf16.mxu0 %v1846_v21  ;;  %1677 = vmatprep.subr.bf16.mxu1 %v1846_v21  ;;  %v1849_v36 = vld [vmem:[%s2081_s24 + $0x20] sm:$0xff]   ;;  %v982_v33 = vld [vmem:[#allocation2 + $0x8] sm:$0xff]  ;;  %v983_v34 = vld [vmem:[#allocation2 + $0x10] sm:$0xff] }
 0x2a5   : > { %1644 = vmatprep.mubr.bf16.mxu0 %v981_v59  ;;  %1652 = vmatprep.mubr.bf16.mxu1 %v985_v31  ;;  %v986_v41 = vld [vmem:[#allocation2 + $0x28] sm:$0xff]  ;;  %v987_v42 = vld [vmem:[#allocation2 + $0x30] sm:$0xff]  ;;  %v984_v45 = vld [vmem:[#allocation2 + $0x18] sm:$0xff] }
 0x2a6   : > { %v1470_v48 = vld [vmem:[%s423_s10] ss:$0 sm:$0xff]  ;;  %s1498_s10 = sshll.u32 (%p2032_p9), %s1246_s19, 2 }
 0x2a7   : > { %1631 = vmatpush3.bf16.msra.mxu0 %v1846_v21  ;;  %1685 = vmatpush3.bf16.msra.mxu1 %v1846_v21  ;;  %v988_v46 = vld [vmem:[#allocation2 + $0x38] sm:$0xff]  ;;  %s1248_s5 = scalar_lea.vmem (%p2032_p9), %s2443_s7, %s1498_s10 }
 0x2a8   : > { %1632 = vmatprep.subr.bf16.mxu0 %v1847_v12  ;;  %1678 = vmatprep.subr.bf16.mxu1 %v1847_v12 }
 0x2ab   : > { %1633 = vmatpush3.bf16.msra.mxu0 %v1847_v12  ;;  %1686 = vmatpush3.bf16.msra.mxu1 %v1847_v12 }
 0x2ac   : > { %1634 = vmatprep.subr.bf16.mxu0 %v1848_v44  ;;  %1679 = vmatprep.subr.bf16.mxu1 %v1848_v44 }
 0x2af   : > { %1635 = vmatpush3.bf16.msra.mxu0 %v1848_v44  ;;  %1687 = vmatpush3.bf16.msra.mxu1 %v1848_v44 }
 0x2b0   : > { %1636 = vmatprep.subr.bf16.mxu0 %v1849_v36  ;;  %1680 = vmatprep.subr.bf16.mxu1 %v1849_v36 }
 0x2b3   : > { %1637 = vmatpush3.bf16.msra.mxu0 %v1849_v36  ;;  %1688 = vmatpush3.bf16.msra.mxu1 %v1849_v36 }
 0x2b4   : > { %1638 = vmatprep.subr.bf16.mxu0 %v1850_v37  ;;  %1681 = vmatprep.subr.bf16.mxu1 %v1850_v37 }
 0x2b7   : > { %1639 = vmatpush3.bf16.msra.mxu0 %v1850_v37  ;;  %1689 = vmatpush3.bf16.msra.mxu1 %v1850_v37 }
 0x2b8   : > { %1640 = vmatprep.subr.bf16.mxu0 %v1851_v20  ;;  %1682 = vmatprep.subr.bf16.mxu1 %v1851_v20 }
 0x2bb   : > { %1641 = vmatpush3.bf16.msra.mxu0 %v1851_v20  ;;  %1690 = vmatpush3.bf16.msra.mxu1 %v1851_v20 }
 0x2bc   : > { %1642 = vmatprep.subr.bf16.mxu0 %v1852_v38  ;;  %1683 = vmatprep.subr.bf16.mxu1 %v1852_v38 }
 0x2bf   : > { %1643 = vmatpush3.bf16.msra.mxu0 %v1852_v38  ;;  %1691 = vmatpush3.bf16.msra.mxu1 %v1852_v38 }
 0x2c2   : > { %1645 = vmatmul.mubr.bf16.vlgmr.msra.gmra.mrb[0].mxu0 %v982_v33  ;;  %1653 = vmatmul.mubr.bf16.vlgmr.msra.gmra.mrb[0].mxu1 %v986_v41 }
 0x2c3   : > { %1648 = vmatprep.mubr.bf16.mxu0 %v983_v34  ;;  %1656 = vmatprep.mubr.bf16.mxu1 %v987_v42 }
 0x2ca   : > { %1649 = vmatmul.mubr.bf16.gmra.mrb[4].mxu0 %v984_v45  ;;  %1657 = vmatmul.mubr.bf16.gmra.mrb[4].mxu1 %v988_v46 }
 0x395   : > { %v1646_v40 = vpop.f32.mrb[0].mxu0  ;;  %v1654_v47 = vpop.f32.mrb[0].mxu1 }
 0x396   : > { %v1094_v49 = vpop.f32.mrb[1].mxu0  ;;  %v1126_v32 = vpop.f32.mrb[1].mxu1  ;;  %v1103_v52 = vadd.f32 %v1646_v40, %v1470_v48  ;;  %v1135_v57 = vadd.f32 %v1654_v47, %v1470_v48 }
 0x397   : > { %v1647_v54 = vpop.f32.mrb[2].mxu0  ;;  %v1655_v55 = vpop.f32.mrb[2].mxu1  ;;  %v1095_v1 = vadd.f32 %v1470_v48, %v1094_v49  ;;  %v1127_v23 = vadd.f32 %v1470_v48, %v1126_v32 }
 0x398   : > { %v1106_v50 = vadd.f32 %v1647_v54, %v1470_v48  ;;  %v1138_v53 = vadd.f32 %v1655_v55, %v1470_v48  ;;  %v1097_v61 = vpop.f32.mrb[3].mxu0  ;;  %v1129_v62 = vpop.f32.mrb[3].mxu1 }
 0x399   : > { %v1098_v43 = vadd.f32 %v1470_v48, %v1097_v61  ;;  %v1130_v2 = vadd.f32 %v1470_v48, %v1129_v62 }
 0x39a   : > { %v1525_v56 = vpack.c.bf16 %v1106_v50, %v1103_v52  ;;  %v1545_v63 = vpack.c.bf16 %v1138_v53, %v1135_v57 }
 0x39b   : > { %v1520_v58 = vpack.c.bf16 %v1098_v43, %v1095_v1  ;;  %v1540_v4 = vpack.c.bf16 %v1130_v2, %v1127_v23 }
 0x39c   : > { %1557 = vst [vmem:[%s2083_s26 + $0x8] sm:$0xff] %v1525_v56   ;;  %1561 = vst [vmem:[%s2083_s26 + $0x28] sm:$0xff] %v1545_v63  }
 0x39d   : > { %1521 = vst [vmem:[%s2083_s26] sm:$0xff] %v1520_v58   ;;  %1560 = vst [vmem:[%s2083_s26 + $0x20] sm:$0xff] %v1540_v4   ;;  %v1650_v6 = vpop.f32.mrb[4].mxu0  ;;  %v1658_v9 = vpop.f32.mrb[4].mxu1 }
 0x39e   : > { %v1110_v5 = vpop.f32.mrb[5].mxu0  ;;  %v1142_v3 = vpop.f32.mrb[5].mxu1  ;;  %v1119_v51 = vadd.f32 %v1650_v6, %v1470_v48  ;;  %v1151_v0 = vadd.f32 %v1658_v9, %v1470_v48 }
 0x39f   : > { %v1651_v7 = vpop.f32.mrb[6].mxu0  ;;  %v1659_v30 = vpop.f32.mrb[6].mxu1  ;;  %v1111_v26 = vadd.f32 %v1470_v48, %v1110_v5  ;;  %v1143_v19 = vadd.f32 %v1470_v48, %v1142_v3  ;;  %1243 = sbr.rel (!%p2032_p9) target bundleno = 945 (0x3b1), region = 97 }
 0x3a0   : > { %v1122_v13 = vadd.f32 %v1651_v7, %v1470_v48  ;;  %v1154_v17 = vadd.f32 %v1659_v30, %v1470_v48  ;;  %v1113_v11 = vpop.f32.mrb[7].mxu0  ;;  %v1145_v18 = vpop.f32.mrb[7].mxu1 }
 0x3a1   : > { %v1114_v16 = vadd.f32 %v1470_v48, %v1113_v11  ;;  %v1146_v22 = vadd.f32 %v1470_v48, %v1145_v18 }
 0x3a2   : > { %v1535_v60 = vpack.c.bf16 %v1122_v13, %v1119_v51  ;;  %v1555_v8 = vpack.c.bf16 %v1154_v17, %v1151_v0 }
 0x3a3   : > { %v1530_v24 = vpack.c.bf16 %v1114_v16, %v1111_v26  ;;  %v1550_v25 = vpack.c.bf16 %v1146_v22, %v1143_v19  ;;  %v1268_v28 = vld [vmem:[%s2083_s26 + $0x8] sm:$0xf] (%p2032_p9)  ;;  %v1270_v29 = vld [vmem:[%s2083_s26 + $0xc] sm:$0xf] (%p2032_p9) }
 0x3a4   : > { %1559 = vst [vmem:[%s2083_s26 + $0x18] sm:$0xff] %v1535_v60   ;;  %1563 = vst [vmem:[%s2083_s26 + $0x38] sm:$0xff] %v1555_v8   ;;  %v1264_v15 = vld [vmem:[%s2083_s26] sm:$0xf] (%p2032_p9)  ;;  %v1266_v27 = vld [vmem:[%s2083_s26 + $0x4] sm:$0xf] (%p2032_p9) }
 0x3a5   : > { %1558 = vst [vmem:[%s2083_s26 + $0x10] sm:$0xff] %v1530_v24   ;;  %1562 = vst [vmem:[%s2083_s26 + $0x30] sm:$0xff] %v1550_v25   ;;  %v1280_v21 = vld [vmem:[%s2083_s26 + $0x20] sm:$0xf] (%p2032_p9)  ;;  %v1282_v12 = vld [vmem:[%s2083_s26 + $0x24] sm:$0xf] (%p2032_p9) }
 0x3a6   : > { %v1284_v44 = vld [vmem:[%s2083_s26 + $0x28] sm:$0xf]  ;;  %v1286_v59 = vld [vmem:[%s2083_s26 + $0x2c] sm:$0xf]  ;;  %1265 = vst [vmem:[%s1248_s5] sm:$0xf] %v1264_v15 }
 0x3a7   : > { %1267 = vst [vmem:[%s1248_s5 + $0xc] sm:$0xf] %v1266_v27  ;;  %1269 = vst [vmem:[%s1248_s5 + $0x18] sm:$0xf] %v1268_v28 }
 0x3a8   : > { %1271 = vst [vmem:[%s1248_s5 + $0x24] sm:$0xf] %v1270_v29  ;;  %1281 = vst [vmem:[%s1248_s5 + $0x60] sm:$0xf] %v1280_v21 }
 0x3a9   : > { %1283 = vst [vmem:[%s1248_s5 + $0x6c] sm:$0xf] %v1282_v12  ;;  %1285 = vst [vmem:[%s1248_s5 + $0x78] sm:$0xf] %v1284_v44 }
 0x3aa   : > { %1287 = vst [vmem:[%s1248_s5 + $0x84] sm:$0xf] %v1286_v59 }
 0x3ab   : > { %v1276_v35 = vld [vmem:[%s2083_s26 + $0x18] sm:$0xf]  ;;  %v1278_v39 = vld [vmem:[%s2083_s26 + $0x1c] sm:$0xf] }
 0x3ac   : > { %v1272_v10 = vld [vmem:[%s2083_s26 + $0x10] sm:$0xf]  ;;  %v1274_v14 = vld [vmem:[%s2083_s26 + $0x14] sm:$0xf]  ;;  %1277 = vst [vmem:[%s1248_s5 + $0x48] sm:$0xf] %v1276_v35 }
 0x3ad   : > { %v1288_v31 = vld [vmem:[%s2083_s26 + $0x30] sm:$0xf]  ;;  %1273 = vst [vmem:[%s1248_s5 + $0x30] sm:$0xf] %v1272_v10  ;;  %1275 = vst [vmem:[%s1248_s5 + $0x3c] sm:$0xf] %v1274_v14 }
 0x3ae   : > { %1279 = vst [vmem:[%s1248_s5 + $0x54] sm:$0xf] %v1278_v39  ;;  %1289 = vst [vmem:[%s1248_s5 + $0x90] sm:$0xf] %v1288_v31  ;;  %v1290_v36 = vld [vmem:[%s2083_s26 + $0x34] sm:$0xf] }
 0x3af   : > { %v1292_v37 = vld [vmem:[%s2083_s26 + $0x38] sm:$0xf]  ;;  %v1294_v20 = vld [vmem:[%s2083_s26 + $0x3c] sm:$0xf]  ;;  %1291 = vst [vmem:[%s1248_s5 + $0x9c] sm:$0xf] %v1290_v36 }
 0x3b0   : > { %1293 = vst [vmem:[%s1248_s5 + $0xa8] sm:$0xf] %v1292_v37  ;;  %1295 = vst [vmem:[%s1248_s5 + $0xb4] sm:$0xf] %v1294_v20 }
 0x3b1 PF: > { %s17_s9 = sadd.s32 1, %s1923_s9   ;;  %s2453_s29 = sld [smem:[#allocation5_spill]] }
 0x3b2   : > { %p14_p3 = scmp.ge.s32.totalorder %s17_s9, 8   ;;  %s2454_s11 = sld [smem:[#allocation6_spill]] }
 0x3b3   : > { %s2455_s8 = sld [smem:[#allocation7_spill]]  ;;  %s2456_s24 = smov %s1895_s25 }
 0x3b4   : > { %s2457_s25 = smov %s2037_s20  ;;  %s2458_s26 = smov %s1903_s27 }
 0x3b5   : > { %s2459_s27 = smov %s2026_s16  ;;  %s2460_s28 = smov %s1915_s30 }
 0x3b6   :  { %16 = sbr.rel (!%p14_p3) target bundleno = 7 (0x7), region = 175 }
 0x3b8   : > { %s2461_s30 = smov %s2454_s11 }

</bundles_post_ra>
